<compile_context>
chip_gen: v7x
topology: tpu7x:2x2x1
jax: 0.10.0
libtpu: 0.0.40
codegen_flags: <defaults>
</compile_context>

<pallas_src>
import jax
import jax.numpy as jnp
from jax.experimental import pallas as pl
from jax.experimental.pallas import tpu as pltpu

EPS = 1e-5
DIMS = (128, 64, 32, 16, 8, 1)  # output widths of fc1..fc6


def _round_up(n, m):
    return (n + m - 1) // m * m


# -----------------------------------------------------------------------------
# Kernel
# -----------------------------------------------------------------------------
def lead_scoring_kernel(x_ref, w1_ref, w2_ref, w3_ref, w4_ref, w5_ref, w6_ref,
                        bias_ref, out_ref):
    # x_ref: (TB, K_pad) bf16.  w*_ref: bf16 (BN folded into w1/w2).
    # bias_ref: (6, 128) f32, row r = bias of layer r+1 (BN folded for 1, 2).

    # fc1 (+ folded bn1) -> relu
    h = jnp.dot(x_ref[...], w1_ref[...], preferred_element_type=jnp.float32)
    h = jnp.maximum(h + bias_ref[0:1, 0:128], 0.0)
    # dropout(0.3): identity in eval mode

    # fc2 (+ folded bn2) -> relu
    h = jnp.dot(h.astype(jnp.bfloat16), w2_ref[...],
                preferred_element_type=jnp.float32)
    h = jnp.maximum(h + bias_ref[1:2, 0:64], 0.0)
    # dropout(0.3): identity in eval mode

    # fc3 -> relu
    h = jnp.dot(h.astype(jnp.bfloat16), w3_ref[...],
                preferred_element_type=jnp.float32)
    h = jnp.maximum(h + bias_ref[2:3, 0:32], 0.0)

    # fc4 -> relu
    h = jnp.dot(h.astype(jnp.bfloat16), w4_ref[...],
                preferred_element_type=jnp.float32)
    h = jnp.maximum(h + bias_ref[3:4, 0:16], 0.0)

    # fc5 -> relu
    h = jnp.dot(h.astype(jnp.bfloat16), w5_ref[...],
                preferred_element_type=jnp.float32)
    h = jnp.maximum(h + bias_ref[4:5, 0:8], 0.0)

    # fc6 (no activation)
    h = jnp.dot(h.astype(jnp.bfloat16), w6_ref[...],
                preferred_element_type=jnp.float32)
    h = h + bias_ref[5:6, 0:1]

    out_ref[...] = h.astype(out_ref.dtype)


# -----------------------------------------------------------------------------
# Host-side parameter preparation (BN fold, K padding, dtype cast, bias pack)
# -----------------------------------------------------------------------------
def prepare_params(params, in_features, weight_dtype=jnp.bfloat16):
    """Fold BN into fc1/fc2, pad fc1's K to 128, pack biases into (6, 128)."""
    k_pad = _round_up(in_features, 128)

    s1 = params["bn1_gamma"] * jax.lax.rsqrt(params["bn1_var"] + EPS)
    s2 = params["bn2_gamma"] * jax.lax.rsqrt(params["bn2_var"] + EPS)

    w1 = params["w1"] * s1                                            # (K, 128)
    b1 = (params["b1"] - params["bn1_mean"]) * s1 + params["bn1_beta"]
    w2 = params["w2"] * s2                                            # (128, 64)
    b2 = (params["b2"] - params["bn2_mean"]) * s2 + params["bn2_beta"]

    w1 = jnp.pad(w1, ((0, k_pad - in_features), (0, 0)))

    weights = [w1, w2, params["w3"], params["w4"], params["w5"], params["w6"]]
    weights = [w.astype(weight_dtype) for w in weights]

    biases = [b1, b2, params["b3"], params["b4"], params["b5"], params["b6"]]
    bias_block = jnp.zeros((len(DIMS), 128), jnp.float32)
    for i, b in enumerate(biases):
        bias_block = bias_block.at[i, : b.shape[-1]].set(
            b.reshape(-1).astype(jnp.float32))
    return weights, bias_block


# -----------------------------------------------------------------------------
# pallas_call wrapper
# -----------------------------------------------------------------------------
def lead_scoring_forward(x, weights, bias_block, *, block_batch=256):
    batch, f_in = x.shape
    k_pad = weights[0].shape[0]

    # Batch tile: >=256 fills the 256-wide MXU on v6e/v7x; shrink (multiple of
    # 8) for tiny batches so block_shape stays legal.
    tb = min(block_batch, _round_up(batch, 8))
    padded_batch = _round_up(batch, tb)

    x_p = jnp.zeros((padded_batch, k_pad), jnp.bfloat16)
    x_p = x_p.at[:batch, :f_in].set(x.astype(jnp.bfloat16))

    const2 = lambda i: (0, 0)
    in_specs = [pl.BlockSpec((tb, k_pad), lambda i: (i, 0))]
    in_specs += [pl.BlockSpec(w.shape, const2) for w in weights]
    in_specs += [pl.BlockSpec(bias_block.shape, const2)]

    out = pl.pallas_call(
        lead_scoring_kernel,
        out_shape=jax.ShapeDtypeStruct((padded_batch, 1), jnp.float32),
        grid=(padded_batch // tb,),
        in_specs=in_specs,
        out_specs=pl.BlockSpec((tb, 1), lambda i: (i, 0)),
        compiler_params=pltpu.CompilerParams(
            dimension_semantics=("parallel",)),
    )(x_p, *weights, bias_block)
    return out[:batch]


# -----------------------------------------------------------------------------
# Synthetic parameters + pure-JAX references
# -----------------------------------------------------------------------------
def init_params(key, in_features):
    """Deterministic synthetic parameters matching LeadScoringNN shapes."""
    dims = [in_features] + list(DIMS)
    params = {}
    keys = jax.random.split(key, 2 * (len(dims) - 1) + 4)
    ki = 0
    for li in range(len(dims) - 1):
        fan_in, fan_out = dims[li], dims[li + 1]
        scale = 1.0 / jnp.sqrt(jnp.float32(fan_in))
        params[f"w{li + 1}"] = jax.random.uniform(
            keys[ki], (fan_in, fan_out), jnp.float32, -scale, scale)
        ki += 1
        params[f"b{li + 1}"] = jax.random.uniform(
            keys[ki], (1, fan_out), jnp.float32, -scale, scale)
        ki += 1
    for name, n in (("bn1", 128), ("bn2", 64)):
        params[f"{name}_gamma"] = jnp.ones((1, n), jnp.float32)
        params[f"{name}_beta"] = jnp.zeros((1, n), jnp.float32)
        params[f"{name}_mean"] = 0.1 * jax.random.normal(keys[ki], (1, n), jnp.float32)
        ki += 1
        params[f"{name}_var"] = jnp.ones((1, n), jnp.float32) + 0.05 * jax.random.uniform(
            keys[ki], (1, n), jnp.float32)
        ki += 1
    return params


def reference_forward(x, params):
    """Original (unfolded, f32) semantics: linear -> BN(eval) -> relu etc."""
    h = x @ params["w1"] + params["b1"]
    h = (h - params["bn1_mean"]) / jnp.sqrt(params["bn1_var"] + EPS)
    h = h * params["bn1_gamma"] + params["bn1_beta"]
    h = jnp.maximum(h, 0.0)
    h = h @ params["w2"] + params["b2"]
    h = (h - params["bn2_mean"]) / jnp.sqrt(params["bn2_var"] + EPS)
    h = h * params["bn2_gamma"] + params["bn2_beta"]
    h = jnp.maximum(h, 0.0)
    h = jnp.maximum(h @ params["w3"] + params["b3"], 0.0)
    h = jnp.maximum(h @ params["w4"] + params["b4"], 0.0)
    h = jnp.maximum(h @ params["w5"] + params["b5"], 0.0)
    return h @ params["w6"] + params["b6"]


def folded_reference(x, weights, bias_block):
    """Same math as the kernel (folded BN, padded K, given weight dtype)."""
    dt = weights[0].dtype
    k_pad = weights[0].shape[0]
    h = jnp.zeros((x.shape[0], k_pad), dt).at[:, : x.shape[1]].set(x.astype(dt))
    for i, w in enumerate(weights):
        h = jnp.dot(h, w, preferred_element_type=jnp.float32)
        h = h + bias_block[i:i + 1, : w.shape[1]]
        if i < len(weights) - 1:
            h = jnp.maximum(h, 0.0).astype(dt)
    return h


if __name__ == "__main__":
    key = jax.random.PRNGKey(0)
    k_params, k_x = jax.random.split(key)

    in_features = 32   # stands in for X_train.shape[1]
    batch = 8

    params = init_params(k_params, in_features)
    x = jax.random.normal(k_x, (batch, in_features), jnp.float32)

    # Kernel params: BN folded, K padded to 128, bf16 weights, f32 biases.
    w_bf16, bias_block = prepare_params(params, in_features, jnp.bfloat16)

    out = lead_scoring_forward(x, w_bf16, bias_block)
    out = jax.block_until_ready(out)
    assert out.shape == (batch, 1)

    # (1) BN-fold correctness in pure f32 (isolates the fold from bf16 loss).
    ref_f32 = reference_forward(x, params)
    w_f32, bias_f32 = prepare_params(params, in_features, jnp.float32)
    folded_f32 = folded_reference(x, w_f32, bias_f32)
    assert jnp.allclose(folded_f32, ref_f32, atol=1e-4, rtol=1e-4), "BN fold mismatch"

    # (2) Kernel vs same-precision (bf16 matmul, f32 accum) reference.
    ref_bf16 = folded_reference(x, w_bf16, bias_block)
    assert jnp.allclose(out, ref_bf16, atol=2e-3, rtol=2e-3), "kernel mismatch vs bf16 ref"

    # (3) End-to-end sanity vs the original f32 model (bf16 precision loss expected).
    assert jnp.allclose(out, ref_f32, atol=1e-1, rtol=1e-1), "kernel drifted from f32 ref"

    print("KERNEL_OK")
</pallas_src>

<mosaic_0001>
module attributes {stable_mosaic.version = 11 : i64} {
  func.func @lead_scoring_kernel(%arg0: i32, %arg1: memref<8x128xbf16, #tpu.memory_space<vmem>>, %arg2: memref<128x128xbf16, #tpu.memory_space<vmem>>, %arg3: memref<128x64xbf16, #tpu.memory_space<vmem>>, %arg4: memref<64x32xbf16, #tpu.memory_space<vmem>>, %arg5: memref<32x16xbf16, #tpu.memory_space<vmem>>, %arg6: memref<16x8xbf16, #tpu.memory_space<vmem>>, %arg7: memref<8x1xbf16, #tpu.memory_space<vmem>>, %arg8: memref<6x128xf32, #tpu.memory_space<vmem>>, %arg9: memref<8x1xf32, #tpu.memory_space<vmem>>) attributes {dimension_semantics = [#tpu.dimension_semantics<parallel>], iteration_bounds = array<i64: 1>, scalar_prefetch = 0 : i64, scratch_operands = 0 : i64, tpu.core_type = #tpu.core_type<tc>, window_params = [{transform_indices = @transform_0, window_bounds = array<i64: 8, 128>}, {pipeline_mode = #tpu.pipeline_mode<synchronous>, transform_indices = @transform_1, window_bounds = array<i64: 128, 128>}, {pipeline_mode = #tpu.pipeline_mode<synchronous>, transform_indices = @transform_2, window_bounds = array<i64: 128, 64>}, {pipeline_mode = #tpu.pipeline_mode<synchronous>, transform_indices = @transform_3, window_bounds = array<i64: 64, 32>}, {pipeline_mode = #tpu.pipeline_mode<synchronous>, transform_indices = @transform_4, window_bounds = array<i64: 32, 16>}, {pipeline_mode = #tpu.pipeline_mode<synchronous>, transform_indices = @transform_5, window_bounds = array<i64: 16, 8>}, {pipeline_mode = #tpu.pipeline_mode<synchronous>, transform_indices = @transform_6, window_bounds = array<i64: 8, 1>}, {pipeline_mode = #tpu.pipeline_mode<synchronous>, transform_indices = @transform_7, window_bounds = array<i64: 6, 128>}, {transform_indices = @transform_8, window_bounds = array<i64: 8, 1>}]} {
    %c0 = arith.constant 0 : index
    %c0_0 = arith.constant 0 : index
    %0 = vector.load %arg1[%c0, %c0_0] : memref<8x128xbf16, #tpu.memory_space<vmem>>, vector<8x128xbf16>
    %c0_1 = arith.constant 0 : index
    %c0_2 = arith.constant 0 : index
    %1 = vector.load %arg2[%c0_1, %c0_2] : memref<128x128xbf16, #tpu.memory_space<vmem>>, vector<128x128xbf16>
    %cst = arith.constant dense<0.000000e+00> : vector<8x128xf32>
    %2 = tpu.matmul %0, %1, %cst {dimension_numbers = #tpu.dot_dimension_numbers<[1], [0], [0], [1], [0, 0, 1, 1], [], []>} : vector<8x128xbf16>, vector<128x128xbf16>, vector<8x128xf32> -> vector<8x128xf32>
    %c0_3 = arith.constant 0 : index
    %c0_4 = arith.constant 0 : index
    %3 = vector.load %arg8[%c0_3, %c0_4] : memref<6x128xf32, #tpu.memory_space<vmem>>, vector<1x128xf32>
    %4 = vector.broadcast %3 : vector<1x128xf32> to vector<8x128xf32>
    %5 = arith.addf %2, %4 : vector<8x128xf32>
    %cst_5 = arith.constant 0.000000e+00 : f32
    %6 = vector.broadcast %cst_5 : f32 to vector<8x128xf32>
    %7 = arith.maximumf %5, %6 : vector<8x128xf32>
    %8 = arith.truncf %7 : vector<8x128xf32> to vector<8x128xbf16>
    %c0_6 = arith.constant 0 : index
    %c0_7 = arith.constant 0 : index
    %9 = vector.load %arg3[%c0_6, %c0_7] : memref<128x64xbf16, #tpu.memory_space<vmem>>, vector<128x64xbf16>
    %cst_8 = arith.constant dense<0.000000e+00> : vector<8x64xf32>
    %10 = tpu.matmul %8, %9, %cst_8 {dimension_numbers = #tpu.dot_dimension_numbers<[1], [0], [0], [1], [0, 0, 1, 1], [], []>} : vector<8x128xbf16>, vector<128x64xbf16>, vector<8x64xf32> -> vector<8x64xf32>
    %c1 = arith.constant 1 : index
    %c0_9 = arith.constant 0 : index
    %11 = vector.load %arg8[%c1, %c0_9] : memref<6x128xf32, #tpu.memory_space<vmem>>, vector<1x64xf32>
    %12 = vector.broadcast %11 : vector<1x64xf32> to vector<8x64xf32>
    %13 = arith.addf %10, %12 : vector<8x64xf32>
    %cst_10 = arith.constant 0.000000e+00 : f32
    %14 = vector.broadcast %cst_10 : f32 to vector<8x64xf32>
    %15 = arith.maximumf %13, %14 : vector<8x64xf32>
    %16 = arith.truncf %15 : vector<8x64xf32> to vector<8x64xbf16>
    %c0_11 = arith.constant 0 : index
    %c0_12 = arith.constant 0 : index
    %17 = vector.load %arg4[%c0_11, %c0_12] : memref<64x32xbf16, #tpu.memory_space<vmem>>, vector<64x32xbf16>
    %cst_13 = arith.constant dense<0.000000e+00> : vector<8x32xf32>
    %18 = tpu.matmul %16, %17, %cst_13 {dimension_numbers = #tpu.dot_dimension_numbers<[1], [0], [0], [1], [0, 0, 1, 1], [], []>} : vector<8x64xbf16>, vector<64x32xbf16>, vector<8x32xf32> -> vector<8x32xf32>
    %c2 = arith.constant 2 : index
    %c0_14 = arith.constant 0 : index
    %19 = vector.load %arg8[%c2, %c0_14] : memref<6x128xf32, #tpu.memory_space<vmem>>, vector<1x32xf32>
    %20 = vector.broadcast %19 : vector<1x32xf32> to vector<8x32xf32>
    %21 = arith.addf %18, %20 : vector<8x32xf32>
    %cst_15 = arith.constant 0.000000e+00 : f32
    %22 = vector.broadcast %cst_15 : f32 to vector<8x32xf32>
    %23 = arith.maximumf %21, %22 : vector<8x32xf32>
    %24 = arith.truncf %23 : vector<8x32xf32> to vector<8x32xbf16>
    %c0_16 = arith.constant 0 : index
    %c0_17 = arith.constant 0 : index
    %25 = vector.load %arg5[%c0_16, %c0_17] : memref<32x16xbf16, #tpu.memory_space<vmem>>, vector<32x16xbf16>
    %cst_18 = arith.constant dense<0.000000e+00> : vector<8x16xf32>
    %26 = tpu.matmul %24, %25, %cst_18 {dimension_numbers = #tpu.dot_dimension_numbers<[1], [0], [0], [1], [0, 0, 1, 1], [], []>} : vector<8x32xbf16>, vector<32x16xbf16>, vector<8x16xf32> -> vector<8x16xf32>
    %c3 = arith.constant 3 : index
    %c0_19 = arith.constant 0 : index
    %27 = vector.load %arg8[%c3, %c0_19] : memref<6x128xf32, #tpu.memory_space<vmem>>, vector<1x16xf32>
    %28 = vector.broadcast %27 : vector<1x16xf32> to vector<8x16xf32>
    %29 = arith.addf %26, %28 : vector<8x16xf32>
    %cst_20 = arith.constant 0.000000e+00 : f32
    %30 = vector.broadcast %cst_20 : f32 to vector<8x16xf32>
    %31 = arith.maximumf %29, %30 : vector<8x16xf32>
    %32 = arith.truncf %31 : vector<8x16xf32> to vector<8x16xbf16>
    %c0_21 = arith.constant 0 : index
    %c0_22 = arith.constant 0 : index
    %33 = vector.load %arg6[%c0_21, %c0_22] : memref<16x8xbf16, #tpu.memory_space<vmem>>, vector<16x8xbf16>
    %cst_23 = arith.constant dense<0.000000e+00> : vector<8x8xf32>
    %34 = tpu.matmul %32, %33, %cst_23 {dimension_numbers = #tpu.dot_dimension_numbers<[1], [0], [0], [1], [0, 0, 1, 1], [], []>} : vector<8x16xbf16>, vector<16x8xbf16>, vector<8x8xf32> -> vector<8x8xf32>
    %c4 = arith.constant 4 : index
    %c0_24 = arith.constant 0 : index
    %35 = vector.load %arg8[%c4, %c0_24] : memref<6x128xf32, #tpu.memory_space<vmem>>, vector<1x8xf32>
    %36 = vector.broadcast %35 : vector<1x8xf32> to vector<8x8xf32>
    %37 = arith.addf %34, %36 : vector<8x8xf32>
    %cst_25 = arith.constant 0.000000e+00 : f32
    %38 = vector.broadcast %cst_25 : f32 to vector<8x8xf32>
    %39 = arith.maximumf %37, %38 : vector<8x8xf32>
    %40 = arith.truncf %39 : vector<8x8xf32> to vector<8x8xbf16>
    %c0_26 = arith.constant 0 : index
    %c0_27 = arith.constant 0 : index
    %41 = vector.load %arg7[%c0_26, %c0_27] : memref<8x1xbf16, #tpu.memory_space<vmem>>, vector<8x1xbf16>
    %cst_28 = arith.constant dense<0.000000e+00> : vector<8x1xf32>
    %42 = tpu.matmul %40, %41, %cst_28 {dimension_numbers = #tpu.dot_dimension_numbers<[1], [0], [0], [1], [0, 0, 1, 1], [], []>} : vector<8x8xbf16>, vector<8x1xbf16>, vector<8x1xf32> -> vector<8x1xf32>
    %c5 = arith.constant 5 : index
    %c0_29 = arith.constant 0 : index
    %43 = vector.load %arg8[%c5, %c0_29] : memref<6x128xf32, #tpu.memory_space<vmem>>, vector<1x1xf32>
    %44 = vector.broadcast %43 : vector<1x1xf32> to vector<8x1xf32>
    %45 = arith.addf %42, %44 : vector<8x1xf32>
    %c0_30 = arith.constant 0 : index
    %c0_31 = arith.constant 0 : index
    %46 = vector.load %arg9[%c0_30, %c0_31] : memref<8x1xf32, #tpu.memory_space<vmem>>, vector<8x1xf32>
    tpu.vector_store %arg9[%c0_30, %c0_31], %45 {strides = array<i32>} : memref<8x1xf32, #tpu.memory_space<vmem>>, vector<8x1xf32>,
    return
  }
  func.func @transform_0(%arg0: i32) -> (i32, i32) {
    %c0_i32 = arith.constant 0 : i32
    %c0_i32_0 = arith.constant 0 : i32
    return %arg0, %c0_i32 : i32, i32
  }
  func.func @transform_1(%arg0: i32) -> (i32, i32) {
    %c0_i32 = arith.constant 0 : i32
    %c0_i32_0 = arith.constant 0 : i32
    %c0_i32_1 = arith.constant 0 : i32
    return %c0_i32, %c0_i32_0 : i32, i32
  }
  func.func @transform_2(%arg0: i32) -> (i32, i32) {
    %c0_i32 = arith.constant 0 : i32
    %c0_i32_0 = arith.constant 0 : i32
    %c0_i32_1 = arith.constant 0 : i32
    return %c0_i32, %c0_i32_0 : i32, i32
  }
  func.func @transform_3(%arg0: i32) -> (i32, i32) {
    %c0_i32 = arith.constant 0 : i32
    %c0_i32_0 = arith.constant 0 : i32
    %c0_i32_1 = arith.constant 0 : i32
    return %c0_i32, %c0_i32_0 : i32, i32
  }
  func.func @transform_4(%arg0: i32) -> (i32, i32) {
    %c0_i32 = arith.constant 0 : i32
    %c0_i32_0 = arith.constant 0 : i32
    %c0_i32_1 = arith.constant 0 : i32
    return %c0_i32, %c0_i32_0 : i32, i32
  }
  func.func @transform_5(%arg0: i32) -> (i32, i32) {
    %c0_i32 = arith.constant 0 : i32
    %c0_i32_0 = arith.constant 0 : i32
    %c0_i32_1 = arith.constant 0 : i32
    return %c0_i32, %c0_i32_0 : i32, i32
  }
  func.func @transform_6(%arg0: i32) -> (i32, i32) {
    %c0_i32 = arith.constant 0 : i32
    %c0_i32_0 = arith.constant 0 : i32
    %c0_i32_1 = arith.constant 0 : i32
    return %c0_i32, %c0_i32_0 : i32, i32
  }
  func.func @transform_7(%arg0: i32) -> (i32, i32) {
    %c0_i32 = arith.constant 0 : i32
    %c0_i32_0 = arith.constant 0 : i32
    %c0_i32_1 = arith.constant 0 : i32
    return %c0_i32, %c0_i32_0 : i32, i32
  }
  func.func @transform_8(%arg0: i32) -> (i32, i32) {
    %c0_i32 = arith.constant 0 : i32
    %c0_i32_0 = arith.constant 0 : i32
    return %arg0, %c0_i32 : i32, i32
  }
}

</mosaic_0001>

<bundles_post_ra>
// kernel: tpu_custom_call.1
= control target key start
LH: loop header
LB: loop body
LE: loop exit
PB: predicated region body
PF: predicated region fallthrough
CT: control target
= control target key end

     0   :  { %v682_v0 = vmov 0.0   ;;  %vm683_vm0 = vmmov 0   ;;  %vm290_vm1 = vcmask 523264   ;;  %vm357_vm2 = vcmask 261120   ;;  %s861_s1 = inlined_call_operand.vmem [shape: bf16[128,128], index: 1, kind: input, shape index: {}]   ;;  %s862_s2 = inlined_call_operand.vmem [shape: bf16[128,64], index: 2, kind: input, shape index: {}]   ;;  %s863_s0 = inlined_call_operand.vmem [shape: bf16[8,128], index: 0, kind: input, shape index: {}]   ;;  %s864_s3 = inlined_call_operand.vmem [shape: bf16[64,32], index: 3, kind: input, shape index: {}]   ;;  %s865_s7 = inlined_call_operand.vmem [shape: f32[6,128], index: 7, kind: input, shape index: {}]   ;;  %s866_s4 = inlined_call_operand.vmem [shape: bf16[32,16], index: 4, kind: input, shape index: {}]   ;;  %s867_s5 = inlined_call_operand.vmem [shape: bf16[16,8], index: 5, kind: input, shape index: {}]   ;;  %s868_s6 = inlined_call_operand.vmem [shape: bf16[8,1], index: 6, kind: input, shape index: {}]   ;;  %s869_s8 = inlined_call_operand.vmem [shape: f32[8,1], index: 8, kind: output, shape index: {}]  }
   0x1   :  { %585 = vmatprep.subr.bf16.mxu0 %v682_v0  ;;  %v659_v1 = vld [vmem:[%s861_s1] sm:$0xff]   ;;  %601 = vmatprep.mubr.msk.bf16.mxu0 %vm683_vm0, %v682_v0  ;;  %v660_v2 = vld [vmem:[%s861_s1 + $0x8] sm:$0xff]   ;;  %v661_v3 = vld [vmem:[%s861_s1 + $0x10] sm:$0xff]   ;;  %vm472_vm3 = vcmask 1043456   ;;  %vm416_vm4 = vcmask 130048   ;;  %vm468_vm5 = vcmask 64512  }
   0x2   :  { %605 = vmatprep.subr.bf16.mxu1 %v682_v0  ;;  %621 = vmatprep.mubr.msk.bf16.mxu1 %vm683_vm0, %v682_v0  ;;  %v667_v4 = vld [vmem:[%s862_s2] sm:$0xff]   ;;  %v662_v5 = vld [vmem:[%s861_s1 + $0x18] sm:$0xff]   ;;  %v668_v6 = vld [vmem:[%s862_s2 + $0x8] sm:$0xff]   ;;  %vm516_vm6 = vcmask 7168  }
   0x3   :  { %586 = vmatpush3.bf16.msra.mxu0 %v659_v1  ;;  %606 = vmatpush3.bf16.msra.mxu1 %v667_v4  ;;  %v663_v7 = vld [vmem:[%s861_s1 + $0x20] sm:$0xff]   ;;  %v669_v8 = vld [vmem:[%s862_s2 + $0x10] sm:$0xff]   ;;  %v664_v9 = vld [vmem:[%s861_s1 + $0x28] sm:$0xff]  }
   0x4   :  { %587 = vmatprep.subr.bf16.mxu0 %v682_v0  ;;  %607 = vmatprep.subr.bf16.mxu1 %v682_v0  ;;  %v670_v10 = vld [vmem:[%s862_s2 + $0x18] sm:$0xff]   ;;  %v665_v11 = vld [vmem:[%s861_s1 + $0x30] sm:$0xff]   ;;  %v671_v12 = vld [vmem:[%s862_s2 + $0x20] sm:$0xff]  }
   0x5   :  { %v666_v13 = vld [vmem:[%s861_s1 + $0x38] sm:$0xff]   ;;  %v672_v14 = vld [vmem:[%s862_s2 + $0x28] sm:$0xff]   ;;  %v30_v15 = vld [vmem:[%s863_s0] sm:$0xf] }
   0x6   :  { %v673_v16 = vld [vmem:[%s862_s2 + $0x30] sm:$0xff]   ;;  %v674_v17 = vld [vmem:[%s862_s2 + $0x38] sm:$0xff]   ;;  %v675_v18 = vld [vmem:[%s864_s3] sm:$0xff]  }
   0x7   :  { %588 = vmatpush3.bf16.msra.mxu0 %v660_v2  ;;  %608 = vmatpush3.bf16.msra.mxu1 %v668_v6  ;;  %v676_v19 = vld [vmem:[%s864_s3 + $0x8] sm:$0xff]   ;;  %v522_v20 = vld [vmem:[%s865_s7] ss:$0 sm:$0xff]  ;;  %v677_v28 = vld [vmem:[%s864_s3 + $0x10] sm:$0xff]  }
   0x8   :  { %589 = vmatprep.subr.bf16.mxu0 %v682_v0  ;;  %609 = vmatprep.subr.bf16.mxu1 %v682_v0  ;;  %v678_v29 = vld [vmem:[%s864_s3 + $0x18] sm:$0xff]   ;;  %v679_v30 = vld [vmem:[%s866_s4] sm:$0xff]   ;;  %v680_v39 = vld [vmem:[%s866_s4 + $0x8] sm:$0xff]  }
   0x9   :  { %v531_v31 = vld [vmem:[%s865_s7 + $0x1] ss:$0 sm:$0xff]  ;;  %v540_v40 = vld [vmem:[%s865_s7 + $0x2] ss:$0 sm:$0xff]  ;;  %v546_v51 = vld [vmem:[%s865_s7 + $0x3] ss:$0 sm:$0xff] }
   0xa   :  { %v681_v47 = vld [vmem:[%s867_s5] sm:$0xff]  }
   0xb   :  { %590 = vmatpush3.bf16.msra.mxu0 %v661_v3  ;;  %610 = vmatpush3.bf16.msra.mxu1 %v669_v8  ;;  %v462_v49 = vld [vmem:[%s868_s6] sm:$0xf]  ;;  %v550_v59 = vld [vmem:[%s865_s7 + $0x4] ss:$0 sm:$0xff]  ;;  %v553_v3 = vld [vmem:[%s865_s7 + $0x5] ss:$0 sm:$0xff] }
   0xc   :  { %591 = vmatprep.subr.bf16.mxu0 %v682_v0  ;;  %611 = vmatprep.subr.bf16.mxu1 %v682_v0  ;;  %v474_v50 = vsel %vm472_vm3, %v462_v49, 0 }
   0xf   :  { %592 = vmatpush3.bf16.msra.mxu0 %v662_v5  ;;  %612 = vmatpush3.bf16.msra.mxu1 %v670_v10 }
  0x10   :  { %593 = vmatprep.subr.bf16.mxu0 %v682_v0  ;;  %613 = vmatprep.subr.bf16.mxu1 %v682_v0 }
  0x13   :  { %594 = vmatpush3.bf16.msra.mxu0 %v663_v7  ;;  %614 = vmatpush3.bf16.msra.mxu1 %v671_v12 }
  0x14   :  { %595 = vmatprep.subr.bf16.mxu0 %v682_v0  ;;  %615 = vmatprep.subr.bf16.mxu1 %v682_v0 }
  0x17   :  { %596 = vmatpush3.bf16.msra.mxu0 %v664_v9  ;;  %616 = vmatpush3.bf16.msra.mxu1 %v672_v14 }
  0x18   :  { %597 = vmatprep.subr.bf16.mxu0 %v682_v0  ;;  %617 = vmatprep.subr.bf16.mxu1 %v682_v0 }
  0x1b   :  { %598 = vmatpush3.bf16.msra.mxu0 %v665_v11  ;;  %618 = vmatpush3.bf16.msra.mxu1 %v673_v16 }
  0x1c   :  { %599 = vmatprep.subr.bf16.mxu0 %v682_v0  ;;  %619 = vmatprep.subr.bf16.mxu1 %v682_v0 }
  0x1f   :  { %600 = vmatpush3.bf16.msra.mxu0 %v666_v13  ;;  %620 = vmatpush3.bf16.msra.mxu1 %v674_v17 }
  0x20   :  { %625 = vmatprep.subr.bf16.mxu0 %v682_v0  ;;  %637 = vmatprep.subr.bf16.mxu1 %v682_v0 }
  0x22   :  { %602 = vmatmul.mubr.bf16.vlgmr.msra.gmra.mrb[0].mxu0 %v30_v15 }
  0x23   :  { %633 = vmatprep.mubr.msk.bf16.mxu0 %vm683_vm0, %v682_v0  ;;  %626 = vmatpush3.bf16.msra.mxu0 %v675_v18 }
  0x24   :  { %627 = vmatprep.subr.bf16.mxu0 %v682_v0 }
  0x27   :  { %628 = vmatpush3.bf16.msra.mxu0 %v676_v19 }
  0x28   :  { %629 = vmatprep.subr.bf16.mxu0 %v682_v0 }
  0x2b   :  { %630 = vmatpush3.bf16.msra.mxu0 %v677_v28 }
  0x2c   :  { %631 = vmatprep.subr.bf16.mxu0 %v682_v0 }
  0x2f   :  { %632 = vmatpush3.bf16.msra.mxu0 %v678_v29 }
  0x30   :  { %651 = vmatprep.subr.bf16.mxu0 %v682_v0 }
  0xf5   :  { %v134_v21 = vpop.f32.mrb[0].mxu0 }
  0xf6   :  { %v135_v22 = vadd.f32 %v522_v20, %v134_v21  ;;  %v603_v23 = vpop.f32.mrb[1].mxu0 }
  0xf7   :  { %v137_v24 = vpop.f32.mrb[2].mxu0 }
  0xf8   :  { %v140_v25 = vmax.f32 %v135_v22, 0.0  ;;  %v604_v26 = vpop.f32.mrb[3].mxu0 }
  0xfa   :  { %v141_v27 = vpack.c.bf16 %v140_v25, %v140_v25 }
  0xfc   :  { %622 = vmatmul.mubr.bf16.vlgmr.msra.gmra.mrb[0].mxu1 %v141_v27 }
  0xfd   :  { %641 = vmatprep.mubr.msk.bf16.mxu1 %vm683_vm0, %v682_v0  ;;  %638 = vmatpush3.bf16.msra.mxu1 %v679_v30 }
  0xfe   :  { %639 = vmatprep.subr.bf16.mxu1 %v682_v0 }
 0x101   :  { %640 = vmatpush3.bf16.msra.mxu1 %v680_v39 }
 0x102   :  { %645 = vmatprep.subr.bf16.mxu1 %v682_v0 }
 0x1cf   :  { %v245_v32 = vpop.f32.mrb[0].mxu1 }
 0x1d0   :  { %v246_v33 = vadd.f32 %v531_v31, %v245_v32  ;;  %v623_v34 = vpop.f32.mrb[1].mxu1 }
 0x1d1   :  { %v248_v35 = vpop.f32.mrb[2].mxu1 }
 0x1d2   :  { %v251_v36 = vmax.f32 %v246_v33, 0.0  ;;  %v624_v37 = vpop.f32.mrb[3].mxu1 }
 0x1d4   :  { %v252_v38 = vpack.c.bf16 %v251_v36, %v251_v36 }
 0x1d6   :  { %634 = vmatmul.mubr.msk.bf16.vlgmr.msra.gmra.mrb[4].mxu0 %vm290_vm1, %v252_v38 }
 0x1d7   :  { %653 = vmatprep.mubr.msk.bf16.mxu0 %vm683_vm0, %v682_v0  ;;  %652 = vmatpush3.bf16.msra.mxu0 %v474_v50 }
 0x2a9   :  { %v328_v41 = vpop.f32.mrb[4].mxu0 }
 0x2aa   :  { %v329_v42 = vadd.f32 %v540_v40, %v328_v41  ;;  %v635_v43 = vpop.f32.mrb[5].mxu0 }
 0x2ab   :  { %v331_v44 = vpop.f32.mrb[6].mxu0 }
 0x2ac   :  { %v334_v45 = vmax.f32 %v329_v42, 0.0  ;;  %v636_v46 = vpop.f32.mrb[7].mxu0 }
 0x2ae   :  { %v335_v48 = vpack.c.bf16 %v334_v45, %v334_v45 }
 0x2b0   :  { %642 = vmatmul.mubr.msk.bf16.vlgmr.msra.gmra.mrb[4].mxu1 %vm357_vm2, %v335_v48 }
 0x2b1   :  { %646 = vmatpush3.bf16.msra.mxu1 %v681_v47  ;;  %647 = vmatprep.mubr.msk.bf16.mxu1 %vm683_vm0, %v682_v0 }
 0x383   :  { %v395_v52 = vpop.f32.mrb[4].mxu1 }
 0x384   :  { %v396_v53 = vadd.f32 %v546_v51, %v395_v52  ;;  %v643_v54 = vpop.f32.mrb[5].mxu1 }
 0x385   :  { %v398_v55 = vpop.f32.mrb[6].mxu1 }
 0x386   :  { %v401_v56 = vmax.f32 %v396_v53, 0.0  ;;  %v644_v57 = vpop.f32.mrb[7].mxu1 }
 0x388   :  { %v402_v58 = vpack.c.bf16 %v401_v56, %v401_v56 }
 0x38a   :  { %648 = vmatmul.mubr.msk.bf16.vlgmr.msra.gmra.mrb[8].mxu1 %vm416_vm4, %v402_v58 }
 0x45d   :  { %v454_v60 = vpop.f32.mrb[8].mxu1 }
 0x45e   :  { %v455_v61 = vadd.f32 %v550_v59, %v454_v60  ;;  %v649_v62 = vpop.f32.mrb[9].mxu1 }
 0x45f   :  { %v457_v63 = vpop.f32.mrb[10].mxu1 }
 0x460   :  { %v460_v0 = vmax.f32 %v455_v61, 0.0  ;;  %v650_v1 = vpop.f32.mrb[11].mxu1 }
 0x462   :  { %v461_v2 = vpack.c.bf16 %v460_v0, %v460_v0 }
 0x464   :  { %654 = vmatmul.mubr.msk.bf16.vlgmr.msra.gmra.mrb[8].mxu0 %vm468_vm5, %v461_v2 }
 0x537   :  { %v510_v4 = vpop.f32.mrb[8].mxu0 }
 0x538   :  { %v511_v5 = vadd.f32 %v553_v3, %v510_v4  ;;  %v655_v6 = vpop.f32.mrb[9].mxu0 }
 0x539   :  { %v513_v7 = vpop.f32.mrb[10].mxu0 }
 0x53a   :  { %517 = vst.msk [vmem:[%s869_s8] sm:$0xff] %vm516_vm6, %v511_v5  ;;  %v656_v8 = vpop.f32.mrb[11].mxu0 }

</bundles_post_ra>
